<compile_context>
chip_gen: v6e
topology: v6e:2x2x1
jax: 0.10.0
libtpu: 0.0.40
codegen_flags: <defaults>
</compile_context>

<pallas_src>
import jax
import jax.numpy as jnp
from jax.experimental import pallas as pl
from jax.experimental.pallas import tpu as pltpu


# --------------------------------------------------------------------------
# Tiny one-shot MLP: g = 1 + gamma, beta  (each [B, C]); runs once per call.
# --------------------------------------------------------------------------
def _mlp_kernel(te_ref, w1_ref, b1_ref, w2g_ref, b2g_ref, w2b_ref, b2b_ref,
                g_ref, beta_ref):
    te = te_ref[...]                                              # (B, in_ch)
    h = jnp.dot(te, w1_ref[...], preferred_element_type=jnp.float32) + b1_ref[...]
    h = jnp.where(h > 0, h, 0.01 * h)                             # LeakyReLU(0.01)
    gamma = (jnp.dot(h, w2g_ref[...], preferred_element_type=jnp.float32)
             + b2g_ref[...])
    beta = (jnp.dot(h, w2b_ref[...], preferred_element_type=jnp.float32)
            + b2b_ref[...])
    g_ref[...] = (1.0 + gamma).astype(g_ref.dtype)
    beta_ref[...] = beta.astype(beta_ref.dtype)


# --------------------------------------------------------------------------
# HBM-bound affine: o = g * x + beta over x reshaped to (B*C, H*W).
# gb_ref packs [g, beta] as the two columns of an (row_blk, 2) tile.
# --------------------------------------------------------------------------
def _affine_kernel(gb_ref, x_ref, o_ref):
    gb = gb_ref[...]                                   # (row_blk, 2) f32
    g = gb[:, 0:1]                                     # (row_blk, 1)
    b = gb[:, 1:2]                                     # (row_blk, 1)
    o_ref[...] = (g * x_ref[...] + b).astype(o_ref.dtype)


def _affine_blocks(R, HW, itemsize):
    """Pick (row_blk, lane_blk): up to ~8 MiB per array tile, lane-dense,
    full-extent lanes when they fit (single contiguous DMA per block), and
    at least 2 grid steps along a parallel axis for v7x's two TensorCores."""
    target_elems = (8 * 1024 * 1024) // itemsize       # 8 MiB / array tile
    sub = max(8, 32 // itemsize)                       # sublane multiple (f32:8, bf16:16)

    if HW <= target_elems // sub:
        lane_blk = HW                                  # full row -> one linear DMA/block
        # NOTE: if HW were not a 128-multiple one could pad/repack for fully
        # unmasked vst; for the shapes here HW is already 128-aligned.
    else:
        lane_blk = ((target_elems // sub) // 128) * 128

    row_cap = min(target_elems // lane_blk, 4096)      # keep padded gb tiles small
    row_cap = max((row_cap // sub) * sub, sub)
    row_blk = R if R <= row_cap else row_cap

    # v7x has 2 TensorCores; a (1,1) grid leaves half the chip idle.
    if pl.cdiv(R, row_blk) * pl.cdiv(HW, lane_blk) < 2:
        if R >= 2 * sub:
            row_blk = ((R // 2) // sub) * sub
        elif HW >= 2 * 128 and HW % 128 == 0:
            lane_blk = ((HW // 2) // 128) * 128

    return row_blk, lane_blk


def feature_wise_affine(x_nchw, text_embed, w1, b1, w2, b2):
    """x_nchw: [B, C, H, W], text_embed: [B, in_ch] (f32)."""
    B, C, H, W = x_nchw.shape
    in_ch = text_embed.shape[1]
    hidden = w1.shape[1]           # 2 * in_ch
    assert w2.shape[1] == 2 * C

    # Weight-side prep (outside the hot path): split Linear2 into the gamma
    # and beta halves so the kernels never slice at a non-128 lane boundary.
    w2_g, w2_b = w2[:, :C], w2[:, C:]
    b2_g, b2_b = b2[:C].reshape(1, C), b2[C:].reshape(1, C)
    b1_2d = b1.reshape(1, hidden)

    # ---- one-shot batched MLP (runs once, tiny, off the critical path) ----
    g, beta = pl.pallas_call(
        _mlp_kernel,
        out_shape=(jax.ShapeDtypeStruct((B, C), jnp.float32),
                   jax.ShapeDtypeStruct((B, C), jnp.float32)),
        grid_spec=pltpu.PrefetchScalarGridSpec(
            num_scalar_prefetch=0,
            grid=(1,),
            in_specs=[
                pl.BlockSpec((B, in_ch), lambda i: (0, 0)),        # text_embed
                pl.BlockSpec((in_ch, hidden), lambda i: (0, 0)),   # W1
                pl.BlockSpec((1, hidden), lambda i: (0, 0)),       # b1
                pl.BlockSpec((hidden, C), lambda i: (0, 0)),       # W2 (gamma half)
                pl.BlockSpec((1, C), lambda i: (0, 0)),            # b2 (gamma half)
                pl.BlockSpec((hidden, C), lambda i: (0, 0)),       # W2 (beta half)
                pl.BlockSpec((1, C), lambda i: (0, 0)),            # b2 (beta half)
            ],
            out_specs=(
                pl.BlockSpec((B, C), lambda i: (0, 0)),            # g = 1 + gamma
                pl.BlockSpec((B, C), lambda i: (0, 0)),            # beta
            ),
        ),
    )(text_embed, w1, b1_2d, w2_g, b2_g, w2_b, b2_b)

    # ---- HBM-bound affine: o = g * x + beta over (B*C, H*W) ---------------
    R, HW = B * C, H * W
    x_flat = x_nchw.reshape(R, HW)                     # row b*C + c <-> g[b, c]
    gb = jnp.stack([g.reshape(R), beta.reshape(R)], axis=1)   # (R, 2): [g, beta]

    itemsize = x_nchw.dtype.itemsize
    row_blk, lane_blk = _affine_blocks(R, HW, itemsize)
    grid = (pl.cdiv(R, row_blk), pl.cdiv(HW, lane_blk))

    # VMEM budget: x-in + out double-buffered tiles, plus the (row_blk, 2)
    # gb tiles (which pad to 128 lanes in VMEM), plus ~2 MiB headroom.
    # Cap at 48 MiB: safe on v7x (64 MiB/TC physical) and plenty on v5e/v6e.
    tile_bytes = row_blk * lane_blk * itemsize
    gb_tile_bytes = row_blk * 128 * 4
    vmem_bytes = 2 * 2 * tile_bytes + 2 * gb_tile_bytes + (2 << 20)
    vmem_bytes = int(min(max(vmem_bytes, 32 << 20), 48 << 20))

    out_flat = pl.pallas_call(
        _affine_kernel,
        out_shape=jax.ShapeDtypeStruct((R, HW), x_nchw.dtype),
        grid_spec=pltpu.PrefetchScalarGridSpec(
            num_scalar_prefetch=0,
            grid=grid,
            in_specs=[
                pl.BlockSpec((row_blk, 2), lambda i, j: (i, 0)),          # [g|beta]
                pl.BlockSpec((row_blk, lane_blk), lambda i, j: (i, j)),   # x
            ],
            out_specs=pl.BlockSpec((row_blk, lane_blk), lambda i, j: (i, j)),
        ),
        compiler_params=pltpu.CompilerParams(
            dimension_semantics=("parallel", "parallel"),
            vmem_limit_bytes=vmem_bytes,
        ),
        cost_estimate=pl.CostEstimate(
            flops=2 * R * HW,
            transcendentals=0,
            bytes_accessed=2 * R * HW * itemsize + 8 * R,
        ),
    )(gb, x_flat)

    return out_flat.reshape(B, C, H, W)


def _reference(x, te, w1, b1, w2, b2):
    # Pure-JAX reference mirroring the PyTorch forward.
    h = te @ w1 + b1
    h = jnp.where(h > 0, h, 0.01 * h)
    gb = h @ w2 + b2                       # [B, 2*C]
    B, C = x.shape[0], x.shape[1]
    gamma = gb[:, :C].reshape(B, C, 1, 1)
    beta = gb[:, C:].reshape(B, C, 1, 1)
    return (1.0 + gamma) * x + beta


if __name__ == "__main__":
    B, in_channels, out_channels, H, W = 2, 32, 4, 16, 16
    hidden = in_channels * 2
    out_feats = out_channels * 2

    key = jax.random.PRNGKey(0)
    kx, kt, kw1, kb1, kw2, kb2 = jax.random.split(key, 6)

    x = jax.random.normal(kx, (B, out_channels, H, W), dtype=jnp.float32)
    text_embed = jax.random.normal(kt, (B, in_channels), dtype=jnp.float32)

    # Deterministic parameter init (PyTorch-style uniform bounds).
    bound1 = 1.0 / jnp.sqrt(in_channels)
    w1 = jax.random.uniform(kw1, (in_channels, hidden), jnp.float32, -bound1, bound1)
    b1 = jax.random.uniform(kb1, (hidden,), jnp.float32, -bound1, bound1)
    bound2 = 1.0 / jnp.sqrt(hidden)
    w2 = jax.random.uniform(kw2, (hidden, out_feats), jnp.float32, -bound2, bound2)
    b2 = jax.random.uniform(kb2, (out_feats,), jnp.float32, -bound2, bound2)

    out = feature_wise_affine(x, text_embed, w1, b1, w2, b2)
    out = jax.block_until_ready(out)

    ref = _reference(x, text_embed, w1, b1, w2, b2)
    assert out.shape == (B, out_channels, H, W)
    assert jnp.allclose(out, ref, atol=1e-5, rtol=1e-5)

    print("KERNEL_OK")
</pallas_src>

<mosaic_0001>
module attributes {stable_mosaic.version = 11 : i64} {
  func.func @_mlp_kernel(%arg0: i32, %arg1: memref<2x32xf32, #tpu.memory_space<vmem>>, %arg2: memref<32x64xf32, #tpu.memory_space<vmem>>, %arg3: memref<1x64xf32, #tpu.memory_space<vmem>>, %arg4: memref<64x4xf32, #tpu.memory_space<vmem>>, %arg5: memref<1x4xf32, #tpu.memory_space<vmem>>, %arg6: memref<64x4xf32, #tpu.memory_space<vmem>>, %arg7: memref<1x4xf32, #tpu.memory_space<vmem>>, %arg8: memref<2x4xf32, #tpu.memory_space<vmem>>, %arg9: memref<2x4xf32, #tpu.memory_space<vmem>>) attributes {dimension_semantics = [#tpu.dimension_semantics<arbitrary>], iteration_bounds = array<i64: 1>, scalar_prefetch = 0 : i64, scratch_operands = 0 : i64, tpu.core_type = #tpu.core_type<tc>, window_params = [{pipeline_mode = #tpu.pipeline_mode<synchronous>, transform_indices = @transform_0, window_bounds = array<i64: 2, 32>}, {pipeline_mode = #tpu.pipeline_mode<synchronous>, transform_indices = @transform_1, window_bounds = array<i64: 32, 64>}, {pipeline_mode = #tpu.pipeline_mode<synchronous>, transform_indices = @transform_2, window_bounds = array<i64: 1, 64>}, {pipeline_mode = #tpu.pipeline_mode<synchronous>, transform_indices = @transform_3, window_bounds = array<i64: 64, 4>}, {pipeline_mode = #tpu.pipeline_mode<synchronous>, transform_indices = @transform_4, window_bounds = array<i64: 1, 4>}, {pipeline_mode = #tpu.pipeline_mode<synchronous>, transform_indices = @transform_5, window_bounds = array<i64: 64, 4>}, {pipeline_mode = #tpu.pipeline_mode<synchronous>, transform_indices = @transform_6, window_bounds = array<i64: 1, 4>}, {pipeline_mode = #tpu.pipeline_mode<synchronous>, transform_indices = @transform_7, window_bounds = array<i64: 2, 4>}, {pipeline_mode = #tpu.pipeline_mode<synchronous>, transform_indices = @transform_8, window_bounds = array<i64: 2, 4>}]} {
    %c0 = arith.constant 0 : index
    %c0_0 = arith.constant 0 : index
    %0 = vector.load %arg1[%c0, %c0_0] : memref<2x32xf32, #tpu.memory_space<vmem>>, vector<2x32xf32>
    %c0_1 = arith.constant 0 : index
    %c0_2 = arith.constant 0 : index
    %1 = vector.load %arg2[%c0_1, %c0_2] : memref<32x64xf32, #tpu.memory_space<vmem>>, vector<32x64xf32>
    %cst = arith.constant dense<0.000000e+00> : vector<2x64xf32>
    %2 = tpu.matmul %0, %1, %cst {dimension_numbers = #tpu.dot_dimension_numbers<[1], [0], [0], [1], [0, 0, 1, 1], [], []>} : vector<2x32xf32>, vector<32x64xf32>, vector<2x64xf32> -> vector<2x64xf32>
    %c0_3 = arith.constant 0 : index
    %c0_4 = arith.constant 0 : index
    %3 = vector.load %arg3[%c0_3, %c0_4] : memref<1x64xf32, #tpu.memory_space<vmem>>, vector<1x64xf32>
    %4 = vector.broadcast %3 : vector<1x64xf32> to vector<2x64xf32>
    %5 = arith.addf %2, %4 : vector<2x64xf32>
    %cst_5 = arith.constant 0.000000e+00 : f32
    %6 = vector.broadcast %cst_5 : f32 to vector<2x64xf32>
    %7 = arith.cmpf ogt, %5, %6 : vector<2x64xf32>
    %cst_6 = arith.constant 0.00999999977 : f32
    %8 = vector.broadcast %cst_6 : f32 to vector<2x64xf32>
    %9 = arith.mulf %8, %5 : vector<2x64xf32>
    %10 = arith.select %7, %5, %9 : vector<2x64xi1>, vector<2x64xf32>
    %c0_7 = arith.constant 0 : index
    %c0_8 = arith.constant 0 : index
    %11 = vector.load %arg4[%c0_7, %c0_8] : memref<64x4xf32, #tpu.memory_space<vmem>>, vector<64x4xf32>
    %cst_9 = arith.constant dense<0.000000e+00> : vector<2x4xf32>
    %12 = tpu.matmul %10, %11, %cst_9 {dimension_numbers = #tpu.dot_dimension_numbers<[1], [0], [0], [1], [0, 0, 1, 1], [], []>} : vector<2x64xf32>, vector<64x4xf32>, vector<2x4xf32> -> vector<2x4xf32>
    %c0_10 = arith.constant 0 : index
    %c0_11 = arith.constant 0 : index
    %13 = vector.load %arg5[%c0_10, %c0_11] : memref<1x4xf32, #tpu.memory_space<vmem>>, vector<1x4xf32>
    %14 = vector.broadcast %13 : vector<1x4xf32> to vector<2x4xf32>
    %15 = arith.addf %12, %14 : vector<2x4xf32>
    %c0_12 = arith.constant 0 : index
    %c0_13 = arith.constant 0 : index
    %16 = vector.load %arg6[%c0_12, %c0_13] : memref<64x4xf32, #tpu.memory_space<vmem>>, vector<64x4xf32>
    %cst_14 = arith.constant dense<0.000000e+00> : vector<2x4xf32>
    %17 = tpu.matmul %10, %16, %cst_14 {dimension_numbers = #tpu.dot_dimension_numbers<[1], [0], [0], [1], [0, 0, 1, 1], [], []>} : vector<2x64xf32>, vector<64x4xf32>, vector<2x4xf32> -> vector<2x4xf32>
    %c0_15 = arith.constant 0 : index
    %c0_16 = arith.constant 0 : index
    %18 = vector.load %arg7[%c0_15, %c0_16] : memref<1x4xf32, #tpu.memory_space<vmem>>, vector<1x4xf32>
    %19 = vector.broadcast %18 : vector<1x4xf32> to vector<2x4xf32>
    %20 = arith.addf %17, %19 : vector<2x4xf32>
    %cst_17 = arith.constant 1.000000e+00 : f32
    %21 = vector.broadcast %cst_17 : f32 to vector<2x4xf32>
    %22 = arith.addf %21, %15 : vector<2x4xf32>
    %c0_18 = arith.constant 0 : index
    %c0_19 = arith.constant 0 : index
    %23 = vector.load %arg8[%c0_18, %c0_19] : memref<2x4xf32, #tpu.memory_space<vmem>>, vector<2x4xf32>
    tpu.vector_store %arg8[%c0_18, %c0_19], %22 {strides = array<i32>} : memref<2x4xf32, #tpu.memory_space<vmem>>, vector<2x4xf32>,
    %c0_20 = arith.constant 0 : index
    %c0_21 = arith.constant 0 : index
    %24 = vector.load %arg9[%c0_20, %c0_21] : memref<2x4xf32, #tpu.memory_space<vmem>>, vector<2x4xf32>
    tpu.vector_store %arg9[%c0_20, %c0_21], %20 {strides = array<i32>} : memref<2x4xf32, #tpu.memory_space<vmem>>, vector<2x4xf32>,
    return
  }
  func.func @transform_0(%arg0: i32) -> (i32, i32) {
    %c0_i32 = arith.constant 0 : i32
    %c0_i32_0 = arith.constant 0 : i32
    %c0_i32_1 = arith.constant 0 : i32
    return %c0_i32, %c0_i32_0 : i32, i32
  }
  func.func @transform_1(%arg0: i32) -> (i32, i32) {
    %c0_i32 = arith.constant 0 : i32
    %c0_i32_0 = arith.constant 0 : i32
    %c0_i32_1 = arith.constant 0 : i32
    return %c0_i32, %c0_i32_0 : i32, i32
  }
  func.func @transform_2(%arg0: i32) -> (i32, i32) {
    %c0_i32 = arith.constant 0 : i32
    %c0_i32_0 = arith.constant 0 : i32
    %c0_i32_1 = arith.constant 0 : i32
    return %c0_i32, %c0_i32_0 : i32, i32
  }
  func.func @transform_3(%arg0: i32) -> (i32, i32) {
    %c0_i32 = arith.constant 0 : i32
    %c0_i32_0 = arith.constant 0 : i32
    %c0_i32_1 = arith.constant 0 : i32
    return %c0_i32, %c0_i32_0 : i32, i32
  }
  func.func @transform_4(%arg0: i32) -> (i32, i32) {
    %c0_i32 = arith.constant 0 : i32
    %c0_i32_0 = arith.constant 0 : i32
    %c0_i32_1 = arith.constant 0 : i32
    return %c0_i32, %c0_i32_0 : i32, i32
  }
  func.func @transform_5(%arg0: i32) -> (i32, i32) {
    %c0_i32 = arith.constant 0 : i32
    %c0_i32_0 = arith.constant 0 : i32
    %c0_i32_1 = arith.constant 0 : i32
    return %c0_i32, %c0_i32_0 : i32, i32
  }
  func.func @transform_6(%arg0: i32) -> (i32, i32) {
    %c0_i32 = arith.constant 0 : i32
    %c0_i32_0 = arith.constant 0 : i32
    %c0_i32_1 = arith.constant 0 : i32
    return %c0_i32, %c0_i32_0 : i32, i32
  }
  func.func @transform_7(%arg0: i32) -> (i32, i32) {
    %c0_i32 = arith.constant 0 : i32
    %c0_i32_0 = arith.constant 0 : i32
    %c0_i32_1 = arith.constant 0 : i32
    return %c0_i32, %c0_i32_0 : i32, i32
  }
  func.func @transform_8(%arg0: i32) -> (i32, i32) {
    %c0_i32 = arith.constant 0 : i32
    %c0_i32_0 = arith.constant 0 : i32
    %c0_i32_1 = arith.constant 0 : i32
    return %c0_i32, %c0_i32_0 : i32, i32
  }
}

</mosaic_0001>

<bundles_post_ra>
// kernel: tpu_custom_call.1
= control target key start
LH: loop header
LB: loop body
LE: loop exit
PB: predicated region body
PF: predicated region fallthrough
CT: control target
= control target key end

     0   :  { %14 = vsyncpa [#allocation3], 0  ;;  %v451_v1 = vmov 0.0   ;;  %vm452_vm0 = vmmov 0   ;;  %s606_s0 = inlined_call_operand.vmem [shape: f32[2,32], index: 0, kind: input, shape index: {}]   ;;  %s607_s1 = inlined_call_operand.vmem [shape: f32[32,64], index: 1, kind: input, shape index: {}]   ;;  %s608_s2 = inlined_call_operand.vmem [shape: f32[1,64], index: 2, kind: input, shape index: {}]   ;;  %s609_s3 = inlined_call_operand.vmem [shape: f32[64,4], index: 3, kind: input, shape index: {}]   ;;  %s610_s4 = inlined_call_operand.vmem [shape: f32[1,4], index: 4, kind: input, shape index: {}]   ;;  %s611_s5 = inlined_call_operand.vmem [shape: f32[64,4], index: 5, kind: input, shape index: {}]   ;;  %s612_s6 = inlined_call_operand.vmem [shape: f32[1,4], index: 6, kind: input, shape index: {}]   ;;  %s613_s7 = inlined_call_operand.hbm [shape: f32[2,4], index: 7, kind: output, shape index: {0}]   ;;  %s614_s8 = inlined_call_operand.hbm [shape: f32[2,4], index: 8, kind: output, shape index: {1}]  }
   0x1   :  { %v34_v0 = vld [vmem:[%s607_s1 + $0x18] sm:$0xff]  ;;  %354 = vmatprep.subr.mxu0 %v451_v1  ;;  %v33_v2 = vld [vmem:[%s607_s1 + $0x10] sm:$0xff]  ;;  %362 = vmatprep.mubr.msk.f32.mxu0 %vm452_vm0, %v451_v1  ;;  %v32_v5 = vld [vmem:[%s607_s1 + $0x8] sm:$0xff] }
   0x2   :  { %v126_v3 = vld [vmem:[%s609_s3 + $0x38] sm:$0xff]  ;;  %355 = vmatpush3.msra.mxu0 %v34_v0  ;;  %365 = vmatprep.subr.mxu1 %v451_v1  ;;  %v125_v4 = vld [vmem:[%s609_s3 + $0x30] sm:$0xff]  ;;  %v124_v6 = vld [vmem:[%s609_s3 + $0x28] sm:$0xff] }
   0x3   :  { %356 = vmatprep.subr.mxu0 %v451_v1  ;;  %366 = vmatpush3.msra.mxu1 %v126_v3  ;;  %v31_v7 = vld [vmem:[%s607_s1] sm:$0xff] }
   0x4   :  { %357 = vmatpush3.msra.mxu0 %v33_v2  ;;  %367 = vmatprep.subr.mxu1 %v451_v1 }
   0x5   :  { %358 = vmatprep.subr.mxu0 %v451_v1  ;;  %368 = vmatpush3.msra.mxu1 %v125_v4 }
   0x6   :  { %15 = vsyncpa [#allocation5], 0  ;;  %359 = vmatpush3.msra.mxu0 %v32_v5  ;;  %v30_v8 = vld [vmem:[%s606_s0] sm:$0x3]  ;;  %vm42_vm1 = vcmask 261120   ;;  %369 = vmatprep.subr.mxu1 %v451_v1  ;;  %v215_v9 = vld [vmem:[%s611_s5 + $0x38] sm:$0xff] }
   0x7   :  { %360 = vmatprep.subr.mxu0 %v451_v1  ;;  %370 = vmatpush3.msra.mxu1 %v124_v6  ;;  %v123_v10 = vld [vmem:[%s609_s3 + $0x20] sm:$0xff]  ;;  %v214_v11 = vld [vmem:[%s611_s5 + $0x30] sm:$0xff]  ;;  %v122_v12 = vld [vmem:[%s609_s3 + $0x18] sm:$0xff]  ;;  %vm134_vm3 = vcmask 523264   ;;  %s453_s25 = smov [#allocation4]   ;;  %vm294_vm4 = vcmask 25600  }
   0x8   :  { %361 = vmatpush3.msra.mxu0 %v31_v7  ;;  %371 = vmatprep.subr.mxu1 %v451_v1  ;;  %v213_v13 = vld [vmem:[%s611_s5 + $0x28] sm:$0xff]  ;;  %v212_v14 = vld [vmem:[%s611_s5 + $0x20] sm:$0xff]  ;;  %v211_v15 = vld [vmem:[%s611_s5 + $0x18] sm:$0xff]  ;;  %s313_s26 = sshll.u32 %s453_s25, 4  ;;  %s314_s26 = int_to_ptr.vmem [resolvable:$true] %s313_s26 }
   0x9   :  { %363 = vmatmul.mubr.msk.f32.vlgmr.msra.gmra.mxu0 %vm42_vm1, %v30_v8  ;;  %384 = vmatprep.subr.mxu0 %v451_v1  ;;  %v121_v16 = vld [vmem:[%s609_s3 + $0x10] sm:$0xff]  ;;  %v120_v18 = vld [vmem:[%s609_s3 + $0x8] sm:$0xff]  ;;  %v119_v20 = vld [vmem:[%s609_s3] sm:$0xff]  ;;  %p412_p1 = scmp.lt.s32.totalorder %s314_s26, %s314_s26 }
   0xa   :  { %385 = vmatpush3.msra.mxu0 %v215_v9  ;;  %372 = vmatpush3.msra.mxu1 %v123_v10  ;;  %v210_v17 = vld [vmem:[%s611_s5 + $0x10] sm:$0xff]  ;;  %v209_v19 = vld [vmem:[%s611_s5 + $0x8] sm:$0xff]  ;;  %v208_v21 = vld [vmem:[%s611_s5] sm:$0xff] }
   0xb   :  { %386 = vmatprep.subr.mxu0 %v451_v1  ;;  %373 = vmatprep.subr.mxu1 %v451_v1  ;;  %v325_v22 = vld [vmem:[%s608_s2] ss:$0 sm:$0xff]  ;;  %s454_s2 = smov [#allocation2]  }
   0xc   :  { %387 = vmatpush3.msra.mxu0 %v214_v11  ;;  %374 = vmatpush3.msra.mxu1 %v122_v12  ;;  %v327_v28 = vld [vmem:[%s610_s4] ss:$0 sm:$0xff]  ;;  %s303_s27 = sshll.u32 %s454_s2, 4  ;;  %s407_s4 = scalar_lea.vmem %s314_s26, 32  ;;  %s304_s27 = int_to_ptr.vmem [resolvable:$true] %s303_s27 }
   0xd   :  { %388 = vmatprep.subr.mxu0 %v451_v1  ;;  %375 = vmatprep.subr.mxu1 %v451_v1  ;;  %v329_v29 = vld [vmem:[%s612_s6] ss:$0 sm:$0xff]  ;;  %p408_p0 = scmp.ne.s32.totalorder %s314_s26, %s407_s4  ;;  %p413_p2 = scmp.lt.s32.totalorder %s407_s4, %s407_s4 }
   0xe   :  { %389 = vmatpush3.msra.mxu0 %v213_v13  ;;  %381 = vmatprep.mubr.msk.f32.mxu1 %vm452_vm0, %v451_v1 }
   0xf   :  { %390 = vmatprep.subr.mxu0 %v451_v1  ;;  %400 = vmatprep.mubr.msk.f32.mxu0 %vm452_vm0, %v451_v1  ;;  %p414_p3 = por %p413_p2, %p412_p1 }
  0x10   :  { %391 = vmatpush3.msra.mxu0 %v212_v14  ;;  %376 = vmatpush3.msra.mxu1 %v121_v16 }
  0x11   :  { %392 = vmatprep.subr.mxu0 %v451_v1  ;;  %377 = vmatprep.subr.mxu1 %v451_v1  ;;  %p415_p4 = pnand %p414_p3, %p408_p0 }
  0x12   :  { %393 = vmatpush3.msra.mxu0 %v211_v15  ;;  %378 = vmatpush3.msra.mxu1 %v120_v18 }
  0x13   :  { %394 = vmatprep.subr.mxu0 %v451_v1  ;;  %379 = vmatprep.subr.mxu1 %v451_v1 }
  0x14   :  { %395 = vmatpush3.msra.mxu0 %v210_v17  ;;  %380 = vmatpush3.msra.mxu1 %v119_v20 }
  0x15   :  { %396 = vmatprep.subr.mxu0 %v451_v1 }
  0x16   :  { %397 = vmatpush3.msra.mxu0 %v209_v19 }
  0x17   :  { %398 = vmatprep.subr.mxu0 %v451_v1 }
  0x18   :  { %399 = vmatpush3.msra.mxu0 %v208_v21 }
  0xc9   :  { %v112_v23 = vpop.f32.mrf.mxu0 }
  0xca   :  { %v113_v24 = vadd.f32 %v325_v22, %v112_v23 }
  0xcb   :  { %v364_v25 = vpop.f32.mrf.mxu0 }
  0xcc   :  { %vm116_vm2 = vcmp.gt.f32.partialorder %v113_v24, 0.0  ;;  %v117_v26 = vmul.f32 0.01, %v113_v24 }
  0xce   :  { %v118_v27 = vsel %vm116_vm2, %v113_v24, %v117_v26 }
  0xcf   :  { %382 = vmatmul.mubr.msk.f32.vlgmr.msra.gmra.mxu1 %vm134_vm3, %v118_v27  ;;  %401 = vmatmul.mubr.msk.f32.vlgmr.msra.gmra.mxu0 %vm134_vm3, %v118_v27 }
 0x18f   :  { %v204_v30 = vpop.f32.mrf.mxu1  ;;  %v289_v31 = vpop.f32.mrf.mxu0 }
 0x190   :  { %v205_v32 = vadd.f32 %v327_v28, %v204_v30  ;;  %v290_v33 = vadd.f32 %v329_v29, %v289_v31 }
 0x191   :  { %v383_v34 = vpop.f32.mrf.mxu1  ;;  %v402_v35 = vpop.f32.mrf.mxu0 }
 0x192   :  { %v293_v36 = vadd.f32 1.0, %v205_v32  ;;  %296 = vst.msk [vmem:[#allocation4] sm:$0x3] %vm294_vm4, %v290_v33 }
 0x193   :  { %418 = shalt.err (!%p415_p4)
}
 0x194   :  { %316 = dma.vmem_to_hbm [thread:$0]  %s314_s26, 32, %s614_s8, [#allocation5]   ;;  %295 = vst.msk [vmem:[#allocation2] sm:$0x3] %vm294_vm4, %v293_v36 }
 0x195   :  { %s427_s29 = scalar_lea.vmem %s304_s27, 32  ;;  %p432_p6 = scmp.lt.s32.totalorder %s304_s27, %s304_s27 }
 0x196   :  { %p428_p5 = scmp.ne.s32.totalorder %s304_s27, %s427_s29  ;;  %p433_p7 = scmp.lt.s32.totalorder %s427_s29, %s427_s29 }
 0x198   :  { %p434_p8 = por %p433_p7, %p432_p6 }
 0x19a   :  { %p435_p9 = pnand %p434_p8, %p428_p5 }
 0x19c   :  { %438 = shalt.err (!%p435_p9)
}
 0x19d   :  { %306 = dma.vmem_to_hbm [thread:$0]  %s304_s27, 32, %s613_s7, [#allocation3]  }
 0x19e   :  { %447 = dma.done.wait [#allocation3], 32  }
 0x19f   :  { %448 = vsyncadd [#allocation3], 4294967264 }
 0x1a0   :  { %449 = dma.done.wait [#allocation5], 32  }
 0x1a1   :  { %450 = vsyncadd [#allocation5], 4294967264 }
 0x1a2   :  { %323 = vsyncpa [#allocation3], 1 }
 0x1a3   :  { %324 = vsyncpa [#allocation5], 1 }

</bundles_post_ra>
